<compile_context>
chip_gen: v5e
topology: v5e:2x2
jax: 0.10.0
libtpu: 0.0.40
codegen_flags: <defaults>
</compile_context>

<pallas_src>
import functools

import jax
import jax.numpy as jnp
from jax import lax
from jax.experimental import pallas as pl
from jax.experimental.pallas import tpu as pltpu


# ---- packed parameter slab layout -------------------------------------------------
_NUM_LAYERS = 5
_LAYER_ROWS = 8      # sublane-aligned rows per layer block (>= out_features of any layer)
_SLAB_COLS = 16      # >= max(in_features) + 1 ; bias lives in column _BIAS_COL
_BIAS_COL = 8


def _pack_params(params):
    """Pack w1..w5 (out,in) and b1..b5 (out,) into one (5*8, 16) f32 slab."""
    blocks = []
    for i in range(1, _NUM_LAYERS + 1):
        w = params[f"w{i}"].astype(jnp.float32)              # (out, in)
        b = params[f"b{i}"].reshape(-1).astype(jnp.float32)  # (out,)
        assert w.shape[0] <= _LAYER_ROWS and w.shape[1] <= _BIAS_COL
        blk = jnp.zeros((_LAYER_ROWS, _SLAB_COLS), jnp.float32)
        blk = blk.at[: w.shape[0], : w.shape[1]].set(w)
        blk = blk.at[: b.shape[0], _BIAS_COL].set(b)
        blocks.append(blk)
    return jnp.concatenate(blocks, axis=0)                    # (40, 16)


# ---- kernel -----------------------------------------------------------------------
def _softplus(x):
    # Matches torch.nn.Softplus(beta=1, threshold=20): returns x when x > 20.
    # No clamp needed: exp may overflow to +inf on the x>20 branch, log1p(inf)=inf (no NaN),
    # and that branch is selected away by the where.
    return jnp.where(x > 20.0, x, jnp.log1p(jnp.exp(x)))


def _sigmoid(z):
    # sigmoid(z) = 0.5 * tanh(z/2) + 0.5  -> single EUP transcendental, no division.
    return 0.5 * jnp.tanh(0.5 * z) + 0.5


def _mlp_kernel(x_ref, p_ref, o_ref, *, hidden, chunk):
    n = hidden
    d = x_ref.shape[0]
    p = p_ref[...]            # (5*_LAYER_ROWS, _SLAB_COLS) packed params

    # Hoist weight slices and lane-broadcast biases out of the chunk loop
    # (JAX does not CSE broadcast_in_dim; don't rebuild these per iteration).
    def wb(idx, in_f, out_f):
        r0 = idx * _LAYER_ROWS
        w = p[r0:r0 + out_f, :in_f]                            # (out, in) -- no transpose
        b = p[r0:r0 + out_f, _BIAS_COL:_BIAS_COL + 1]          # (out, 1)
        return w, jnp.broadcast_to(b, (out_f, chunk))

    w1, b1 = wb(0, d, n)
    w2, b2 = wb(1, n, n)
    w3, b3 = wb(2, n, n)
    w4, b4 = wb(3, n, n)
    w5, b5 = wb(4, n, 1)

    num_chunks = x_ref.shape[1] // chunk

    def body(c, carry):
        c0 = pl.multiple_of(c * chunk, 128)
        x = x_ref[:, pl.ds(c0, chunk)]                         # (d, chunk) lane-dense
        h = _softplus(jnp.dot(w1, x, preferred_element_type=jnp.float32) + b1)
        h = _softplus(jnp.dot(w2, h, preferred_element_type=jnp.float32) + b2)
        h = _softplus(jnp.dot(w3, h, preferred_element_type=jnp.float32) + b3)
        h = _sigmoid(jnp.dot(w4, h, preferred_element_type=jnp.float32) + b4)
        y = jnp.dot(w5, h, preferred_element_type=jnp.float32) + b5   # (1, chunk)
        o_ref[:, pl.ds(c0, chunk)] = y.astype(o_ref.dtype)
        return carry

    lax.fori_loop(0, num_chunks, body, 0, unroll=(num_chunks <= 8))


# ---- wrapper ----------------------------------------------------------------------
@functools.partial(jax.jit, static_argnames=("block_b",))
def soft_sigmoid_diffusion(x, params, block_b=32768):
    """x: (B, d) float32. params: dict of w1..w5 (out,in) and b1..b5 (out,).

    Returns (B, 1) float32, matching the PyTorch module's forward.
    """
    B, d = x.shape
    n = params["w2"].shape[0]

    lane = 128
    chunk_target = 1024  # in-kernel lane sub-chunk for strip-mined compute

    # Requested lane tile, rounded to 128, never bigger than needed to cover B.
    blk = max(lane, pl.cdiv(block_b, lane) * lane)
    blk = min(blk, pl.cdiv(B, lane) * lane)
    # v7x megacore: give the 1-D "parallel" grid >= 2 steps whenever the batch allows it.
    if B > lane and pl.cdiv(B, blk) < 2:
        blk = pl.cdiv(pl.cdiv(B, 2), lane) * lane
    # Make the tile a multiple of the in-kernel chunk so the fori_loop divides evenly.
    if blk > chunk_target:
        blk = pl.cdiv(blk, chunk_target) * chunk_target
        chunk = chunk_target
    else:
        chunk = blk

    grid = (pl.cdiv(B, blk),)

    # Raise scoped VMEM only if a caller-requested huge tile needs it (v5e default is 16 MiB;
    # v7x has only 64 MiB physical, so cap there).  The 32768-lane default needs no override.
    tile_bytes = 8 * blk * 4                       # sublane-padded (<=8, blk) f32 tile
    est = 2 * 2 * tile_bytes + (2 << 20)           # double-buffered in+out + params/intermediates
    vmem_limit = None
    if est > (14 << 20):
        vmem_limit = min(max(est, 32 << 20), 64 << 20)

    # Layout plumbing: batch on the lane axis.  No pad -- ragged last block handled by Pallas
    # (OOB input lanes undefined, OOB output writes dropped; math is purely per-lane).
    xt = x.astype(jnp.float32).T                   # (d, B)
    slab = _pack_params(params)                    # (40, 16)

    grid_spec = pltpu.PrefetchScalarGridSpec(
        num_scalar_prefetch=0,
        grid=grid,
        in_specs=[
            pl.BlockSpec((d, blk), lambda i: (0, i)),                       # x tile (lane-dense)
            pl.BlockSpec((_NUM_LAYERS * _LAYER_ROWS, _SLAB_COLS),
                         lambda i: (0, 0)),                                 # params, fetched once
        ],
        out_specs=pl.BlockSpec((1, blk), lambda i: (0, i)),                 # lane-dense output
    )

    out = pl.pallas_call(
        functools.partial(_mlp_kernel, hidden=n, chunk=chunk),
        out_shape=jax.ShapeDtypeStruct((1, B), jnp.float32),
        grid_spec=grid_spec,
        compiler_params=pltpu.CompilerParams(
            dimension_semantics=("parallel",),
            vmem_limit_bytes=vmem_limit,
        ),
    )(xt, slab)

    return out.reshape(B, 1)                       # (1, B) -> (B, 1), pure layout


# ---- init + reference -------------------------------------------------------------
def init_params(key, d=3, n=8):
    """Deterministic init mimicking nn.Linear's U(-1/sqrt(fan_in), 1/sqrt(fan_in))."""
    dims = [(n, d), (n, n), (n, n), (n, n), (1, n)]
    params = {}
    for idx, (out_f, in_f) in enumerate(dims, start=1):
        key, kw, kb = jax.random.split(key, 3)
        bound = 1.0 / jnp.sqrt(float(in_f))
        params[f"w{idx}"] = jax.random.uniform(kw, (out_f, in_f), jnp.float32, -bound, bound)
        params[f"b{idx}"] = jax.random.uniform(kb, (out_f,), jnp.float32, -bound, bound)
    return params


def reference(x, params):
    def softplus(v):
        return jnp.where(v > 20.0, v, jnp.log1p(jnp.exp(jnp.minimum(v, 20.0))))
    h = softplus(x @ params["w1"].T + params["b1"])
    h = softplus(h @ params["w2"].T + params["b2"])
    h = softplus(h @ params["w3"].T + params["b3"])
    h = jax.nn.sigmoid(h @ params["w4"].T + params["b4"])
    return h @ params["w5"].T + params["b5"]


if __name__ == "__main__":
    d, n = 3, 8
    key = jax.random.PRNGKey(0)
    kp, kx1, kx2 = jax.random.split(key, 3)
    params = init_params(kp, d=d, n=n)

    ok = True

    # Case 1: small batch, non-multiple of 128 -> 2-step grid with a ragged last block.
    B1 = 300
    x1 = jax.random.normal(kx1, (B1, d), jnp.float32)
    out1 = jax.block_until_ready(soft_sigmoid_diffusion(x1, params))
    ref1 = reference(x1, params)
    ok &= out1.shape == (B1, 1)
    ok &= bool(jnp.allclose(out1, ref1, atol=5e-5, rtol=5e-5))

    # Case 2: exercises the in-kernel chunk loop (blk=2048, chunk=1024) + ragged last block.
    B2 = 2816
    x2 = jax.random.normal(kx2, (B2, d), jnp.float32)
    out2 = jax.block_until_ready(soft_sigmoid_diffusion(x2, params, block_b=2048))
    ref2 = reference(x2, params)
    ok &= out2.shape == (B2, 1)
    ok &= bool(jnp.allclose(out2, ref2, atol=5e-5, rtol=5e-5))

    assert ok, (float(jnp.max(jnp.abs(out1 - ref1))), float(jnp.max(jnp.abs(out2 - ref2))))
    print("KERNEL_OK")
</pallas_src>

<mosaic_0001>
module attributes {stable_mosaic.version = 11 : i64} {
  func.func @_mlp_kernel(%arg0: i32, %arg1: memref<3x256xf32, #tpu.memory_space<vmem>>, %arg2: memref<40x16xf32, #tpu.memory_space<vmem>>, %arg3: memref<1x256xf32, #tpu.memory_space<vmem>>) attributes {dimension_semantics = [#tpu.dimension_semantics<parallel>], iteration_bounds = array<i64: 2>, scalar_prefetch = 0 : i64, scratch_operands = 0 : i64, tpu.core_type = #tpu.core_type<tc>, window_params = [{transform_indices = @transform_0, window_bounds = array<i64: 3, 256>}, {pipeline_mode = #tpu.pipeline_mode<synchronous>, transform_indices = @transform_1, window_bounds = array<i64: 40, 16>}, {transform_indices = @transform_2, window_bounds = array<i64: 1, 256>}]} {
    %c0 = arith.constant 0 : index
    %c0_0 = arith.constant 0 : index
    %0 = vector.load %arg2[%c0, %c0_0] : memref<40x16xf32, #tpu.memory_space<vmem>>, vector<40x16xf32>
    %1 = vector.extract_strided_slice %0 {offsets = [0, 0], sizes = [8, 3], strides = [1, 1]} : vector<40x16xf32> to vector<8x3xf32>
    %2 = vector.extract_strided_slice %0 {offsets = [0, 8], sizes = [8, 1], strides = [1, 1]} : vector<40x16xf32> to vector<8x1xf32>
    %3 = vector.shape_cast %2 : vector<8x1xf32> to vector<8x1xf32>
    %4 = vector.broadcast %3 : vector<8x1xf32> to vector<8x256xf32>
    %5 = vector.extract_strided_slice %0 {offsets = [8, 0], sizes = [8, 8], strides = [1, 1]} : vector<40x16xf32> to vector<8x8xf32>
    %6 = vector.extract_strided_slice %0 {offsets = [8, 8], sizes = [8, 1], strides = [1, 1]} : vector<40x16xf32> to vector<8x1xf32>
    %7 = vector.shape_cast %6 : vector<8x1xf32> to vector<8x1xf32>
    %8 = vector.broadcast %7 : vector<8x1xf32> to vector<8x256xf32>
    %9 = vector.extract_strided_slice %0 {offsets = [16, 0], sizes = [8, 8], strides = [1, 1]} : vector<40x16xf32> to vector<8x8xf32>
    %10 = vector.extract_strided_slice %0 {offsets = [16, 8], sizes = [8, 1], strides = [1, 1]} : vector<40x16xf32> to vector<8x1xf32>
    %11 = vector.shape_cast %10 : vector<8x1xf32> to vector<8x1xf32>
    %12 = vector.broadcast %11 : vector<8x1xf32> to vector<8x256xf32>
    %13 = vector.extract_strided_slice %0 {offsets = [24, 0], sizes = [8, 8], strides = [1, 1]} : vector<40x16xf32> to vector<8x8xf32>
    %14 = vector.extract_strided_slice %0 {offsets = [24, 8], sizes = [8, 1], strides = [1, 1]} : vector<40x16xf32> to vector<8x1xf32>
    %15 = vector.shape_cast %14 : vector<8x1xf32> to vector<8x1xf32>
    %16 = vector.broadcast %15 : vector<8x1xf32> to vector<8x256xf32>
    %17 = vector.extract_strided_slice %0 {offsets = [32, 0], sizes = [1, 8], strides = [1, 1]} : vector<40x16xf32> to vector<1x8xf32>
    %18 = vector.extract_strided_slice %0 {offsets = [32, 8], sizes = [1, 1], strides = [1, 1]} : vector<40x16xf32> to vector<1x1xf32>
    %19 = vector.shape_cast %18 : vector<1x1xf32> to vector<1x1xf32>
    %20 = vector.broadcast %19 : vector<1x1xf32> to vector<1x256xf32>
    %c0_i32 = arith.constant 0 : i32
    %c256_i32 = arith.constant 256 : i32
    %21 = arith.muli %c0_i32, %c256_i32 : i32
    %22 = tpu.assume_multiple %21, 128 : i32
    %c0_1 = arith.constant 0 : index
    %23 = arith.index_cast %22 : i32 to index
    %24 = vector.load %arg1[%c0_1, %23] : memref<3x256xf32, #tpu.memory_space<vmem>>, vector<3x256xf32>
    %cst = arith.constant dense<0.000000e+00> : vector<8x256xf32>
    %25 = tpu.matmul %1, %24, %cst {dimension_numbers = #tpu.dot_dimension_numbers<[1], [0], [0], [1], [0, 0, 1, 1], [], []>} : vector<8x3xf32>, vector<3x256xf32>, vector<8x256xf32> -> vector<8x256xf32>
    %26 = arith.addf %25, %4 : vector<8x256xf32>
    %cst_2 = arith.constant 2.000000e+01 : f32
    %27 = vector.broadcast %cst_2 : f32 to vector<8x256xf32>
    %28 = arith.cmpf ogt, %26, %27 : vector<8x256xf32>
    %29 = math.exp %26 : vector<8x256xf32>
    %30 = math.log1p %29 : vector<8x256xf32>
    %31 = arith.select %28, %26, %30 : vector<8x256xi1>, vector<8x256xf32>
    %cst_3 = arith.constant dense<0.000000e+00> : vector<8x256xf32>
    %32 = tpu.matmul %5, %31, %cst_3 {dimension_numbers = #tpu.dot_dimension_numbers<[1], [0], [0], [1], [0, 0, 1, 1], [], []>} : vector<8x8xf32>, vector<8x256xf32>, vector<8x256xf32> -> vector<8x256xf32>
    %33 = arith.addf %32, %8 : vector<8x256xf32>
    %cst_4 = arith.constant 2.000000e+01 : f32
    %34 = vector.broadcast %cst_4 : f32 to vector<8x256xf32>
    %35 = arith.cmpf ogt, %33, %34 : vector<8x256xf32>
    %36 = math.exp %33 : vector<8x256xf32>
    %37 = math.log1p %36 : vector<8x256xf32>
    %38 = arith.select %35, %33, %37 : vector<8x256xi1>, vector<8x256xf32>
    %cst_5 = arith.constant dense<0.000000e+00> : vector<8x256xf32>
    %39 = tpu.matmul %9, %38, %cst_5 {dimension_numbers = #tpu.dot_dimension_numbers<[1], [0], [0], [1], [0, 0, 1, 1], [], []>} : vector<8x8xf32>, vector<8x256xf32>, vector<8x256xf32> -> vector<8x256xf32>
    %40 = arith.addf %39, %12 : vector<8x256xf32>
    %cst_6 = arith.constant 2.000000e+01 : f32
    %41 = vector.broadcast %cst_6 : f32 to vector<8x256xf32>
    %42 = arith.cmpf ogt, %40, %41 : vector<8x256xf32>
    %43 = math.exp %40 : vector<8x256xf32>
    %44 = math.log1p %43 : vector<8x256xf32>
    %45 = arith.select %42, %40, %44 : vector<8x256xi1>, vector<8x256xf32>
    %cst_7 = arith.constant dense<0.000000e+00> : vector<8x256xf32>
    %46 = tpu.matmul %13, %45, %cst_7 {dimension_numbers = #tpu.dot_dimension_numbers<[1], [0], [0], [1], [0, 0, 1, 1], [], []>} : vector<8x8xf32>, vector<8x256xf32>, vector<8x256xf32> -> vector<8x256xf32>
    %47 = arith.addf %46, %16 : vector<8x256xf32>
    %cst_8 = arith.constant 5.000000e-01 : f32
    %48 = vector.broadcast %cst_8 : f32 to vector<8x256xf32>
    %49 = arith.mulf %48, %47 : vector<8x256xf32>
    %50 = math.tanh %49 : vector<8x256xf32>
    %cst_9 = arith.constant 5.000000e-01 : f32
    %51 = vector.broadcast %cst_9 : f32 to vector<8x256xf32>
    %52 = arith.mulf %51, %50 : vector<8x256xf32>
    %cst_10 = arith.constant 5.000000e-01 : f32
    %53 = vector.broadcast %cst_10 : f32 to vector<8x256xf32>
    %54 = arith.addf %52, %53 : vector<8x256xf32>
    %cst_11 = arith.constant dense<0.000000e+00> : vector<1x256xf32>
    %55 = tpu.matmul %17, %54, %cst_11 {dimension_numbers = #tpu.dot_dimension_numbers<[1], [0], [0], [1], [0, 0, 1, 1], [], []>} : vector<1x8xf32>, vector<8x256xf32>, vector<1x256xf32> -> vector<1x256xf32>
    %56 = arith.addf %55, %20 : vector<1x256xf32>
    %c0_12 = arith.constant 0 : index
    %57 = arith.index_cast %22 : i32 to index
    %58 = vector.load %arg3[%c0_12, %57] : memref<1x256xf32, #tpu.memory_space<vmem>>, vector<1x256xf32>
    tpu.vector_store %arg3[%c0_12, %57], %56 {strides = array<i32>} : memref<1x256xf32, #tpu.memory_space<vmem>>, vector<1x256xf32>,
    %c1_i32 = arith.constant 1 : i32
    return
  }
  func.func @transform_0(%arg0: i32) -> (i32, i32) {
    %c0_i32 = arith.constant 0 : i32
    %c0_i32_0 = arith.constant 0 : i32
    return %c0_i32, %arg0 : i32, i32
  }
  func.func @transform_1(%arg0: i32) -> (i32, i32) {
    %c0_i32 = arith.constant 0 : i32
    %c0_i32_0 = arith.constant 0 : i32
    %c0_i32_1 = arith.constant 0 : i32
    return %c0_i32, %c0_i32_0 : i32, i32
  }
  func.func @transform_2(%arg0: i32) -> (i32, i32) {
    %c0_i32 = arith.constant 0 : i32
    %c0_i32_0 = arith.constant 0 : i32
    return %c0_i32, %arg0 : i32, i32
  }
}

</mosaic_0001>

<bundles_post_ra>
// kernel: soft_sigmoid_diffusion.1
= control target key start
LH: loop header
LB: loop body
LE: loop exit
PB: predicated region body
PF: predicated region fallthrough
CT: control target
= control target key end

     0   :  { %7 = vsyncpa [#allocation3], 0  ;;  %s923_s0 = inlined_call_operand.vmem [shape: f32[3,300], index: 0, kind: input, shape index: {}]   ;;  %s924_s1 = inlined_call_operand.vmem [shape: f32[40,16], index: 1, kind: input, shape index: {}]   ;;  %s925_s2 = inlined_call_operand.hbm [shape: f32[1,300], index: 2, kind: output, shape index: {}]  }
   0x1   :  { %9 = vsyncpa [#allocation3 + $0x1], 0  ;;  %s783_s9 = smov 0   ;;  %s785_s10 = smov 0  }
   0x2   :  { %s787_s11 = smov 0   ;;  %s789_s12 = smov 0  }
   0x3 LB: > { %s596_s13 = sadd.s32 4294967295, %s764_s12   ;;  %s597_s14 = sadd.s32 4294967294, %s764_s12   ;;  %s764_s12 = sphi %s789_s12, %s931_s12   ;;  %s760_s11 = sphi %s787_s11, %s930_s11   ;;  %s756_s10 = sphi %s785_s10, %s929_s10   ;;  %s752_s9 = sphi %s783_s9, %s928_s9  }
   0x4   : > { %s806_s15 = sadd.s32 1, %s764_s12   ;;  %s69_s16 = sadd.s32 1, %s760_s11 }
   0x5   : > { %s66_s17 = ssub.s32 %s764_s12, %s806_s15  ;;  %p79_p0 = scmp.ne.s32.totalorder %s760_s11, %s756_s10 }
   0x6   : > { %p67_p1 = scmp.eq.s32.totalorder %s66_s17, 0  ;;  %p80_p2 = scmp.eq.s32.totalorder %s596_s13, 1 }
   0x7   : > { %p85_p3 = scmp.ne.s32.totalorder %s756_s10, %s752_s9  ;;  %p86_p4 = scmp.eq.s32.totalorder %s597_s14, 1 }
   0x8   : > { %s816_s18 = scalar_select %p67_p1, %s760_s11, %s69_s16  }
   0x9   : > { %p818_p5 = por %p80_p2, %p79_p0  ;;  %p822_p6 = por %p86_p4, %p85_p3 }
   0xa   : > { %p600_p7 = scmp.ge.s32.totalorder %s764_s12, 1  ;;  %p124_p8 = scmp.lt.s32.totalorder %s764_s12, 3 }
   0xc   : > { %p125_p9 = pnand %p600_p7, %p124_p8 }
   0xd   : > { %s828_s21 = sshll.u32 (!%p125_p9), %s596_s13, 1  ;;  %s147_s13 = sand.u32 (!%p125_p9), 1, %s756_s10  }
   0xe   : > { %128 = sbr.rel (%p125_p9) target bundleno = 802 (0x322), region = 28  ;;  %p155_p10 = scmp.lt.s32.totalorder (!%p125_p9), %s828_s21, 2 }
   0xf   : > { %s601_s14 = sshll.u32 (!%p125_p9), %s147_s13, 1  ;;  %s864_s17 = scalar_lea.sflag (!%p125_p9), [#allocation3], %s147_s13 }
  0x10   : > { %s149_s16 = scalar_lea.vmem (!%p125_p9), [#allocation2], %s601_s14 }
  0x13   : > { %v168_v0 = vld [vmem:[%s924_s1] sm:$0xff]  ;;  %v766_v1 = vmov 8   ;;  %s156_s24 = scalar_select %p155_p10, %s828_s21, 2  ;;  %v169_v3 = vld [vmem:[%s924_s1 + $0x8] sm:$0xff]  ;;  %vm206_vm0 = vcmask 1042432   ;;  %vm203_vm1 = vcmask 23552  }
  0x14   : > { %660 = vset.pattern.permute.xlu0 %v766_v1  ;;  %661 = vset.pattern.permute.xlu1 %v766_v1  ;;  %vm277_vm5 = vcmask 64512   ;;  %v170_v33 = vld [vmem:[%s924_s1 + $0x10] sm:$0xff]  ;;  %v849_v36 = vld [vmem:[%s924_s1 + $0x18] sm:$0xff]  ;;  %vm509_vm15 = vcmask 1040384   ;;  %s526_s22 = ssub.s32 (%p818_p5), 3, %s828_s21 }
  0x15   : > { %175 = vperm.xlu0 %660, %v168_v0   ;;  %662 = vset.pattern.permute.xlu2 %v766_v1  ;;  %s603_s25 = sshll.u32 %s156_s24, 2  ;;  %p527_p11 = scmp.lt.s32.totalorder (%p818_p5), %s526_s22, 2 }
  0x16   : > { %s158_s28 = scalar_lea.vmem %s923_s0, %s603_s25  ;;  %185 = vperm.xlu1 %661, %v170_v33  }
  0x17   : > { %v198_v2 = vld [vmem:[%s158_s28] sm:$0x77] }
  0x18   : > { %200 = vst [vmem:[#allocation1] ss:$2 sm:$0xff] %v198_v2 }
  0x1d   : > { %180 = vperm.xlu0 %660, %v169_v3  }
  0x1e   : > { %190 = vperm.xlu1 %661, %v849_v36  }
  0x1f   : > { %v201_v4 = vld.sshfl [vmem:[#allocation1] sm:$0xff pattern:$0x75316420]  ;;  %v202_v5 = vld.sshfl [vmem:[#allocation1 + $0x8] sm:$0xff pattern:$0x75316420] }
  0x20   : > { %604 = vmatpush.msk.msra.mxu0 %vm206_vm0, %v201_v4  ;;  %606 = vmatpush.msk.msra.mxu1 %vm206_vm0, %v202_v5 }
  0x21   : > { %605 = vmatmul.msk.f32.vlgmr.msra.gmra.mxu0 %vm203_vm1, %v168_v0  ;;  %607 = vmatmul.msk.f32.vlgmr.msra.gmra.mxu1 %vm203_vm1, %v168_v0 }
  0x87   : > { %v176_v6 = vpop.permute.xlu0 %175 }
  0x88   : > { %v186_v62 = vpop.permute.xlu1 %185 }
  0x8f   : > { %v181_v34 = vpop.permute.xlu0 %180 }
  0x9e   : > { %v228_v7 = vpop.f32.mrf.mxu0  ;;  %v248_v8 = vpop.f32.mrf.mxu1 }
  0x9f   : > { %v229_v9 = vadd.f32 %v228_v7, %v176_v6  ;;  %v249_v10 = vadd.f32 %v248_v8, %v176_v6 }
  0xa1   : > { %v253_v11 = vmul.f32 1.442695, %v229_v9  ;;  %v255_v12 = vmul.f32 1.442695, %v249_v10  ;;  %vm251_vm3 = vcmp.gt.f32.partialorder %v229_v9, 20.0  ;;  %vm252_vm6 = vcmp.gt.f32.partialorder %v249_v10, 20.0 }
  0xa3   : > { %663 = vpow2.f32 %v253_v11 }
  0xa4   : > { %665 = vpow2.f32 %v255_v12 }
  0xa9   : > { %v664_v13 = vpop.eup %663 }
  0xaa   : > { %v666_v14 = vpop.eup %665  ;;  %v257_v15 = vadd.f32 1.0, %v664_v13  ;;  %v260_v16 = vmul.f32 -0.5, %v664_v13  ;;  %v263_v20 = vand.u32 2147483647, %v664_v13 }
  0xab   : > { %v266_v17 = vadd.f32 1.0, %v666_v14  ;;  %v269_v18 = vmul.f32 -0.5, %v666_v14  ;;  %v272_v22 = vand.u32 2147483647, %v666_v14 }
  0xac   : > { %667 = vlog2.f32 %v257_v15  ;;  %v261_v19 = vadd.f32 1.0, %v260_v16  ;;  %vm264_vm2 = vcmp.lt.f32.partialorder %v263_v20, 0.0004427343 }
  0xad   : > { %669 = vlog2.f32 %v266_v17  ;;  %v270_v21 = vadd.f32 1.0, %v269_v18  ;;  %vm273_vm4 = vcmp.lt.f32.partialorder %v272_v22, 0.0004427343 }
  0xae   : > { %v262_v26 = vmul.f32 %v664_v13, %v261_v19 }
  0xaf   : > { %v271_v28 = vmul.f32 %v666_v14, %v270_v21 }
  0xb2   : > { %v668_v23 = vpop.eup %667 }
  0xb3   : > { %v670_v24 = vpop.eup %669  ;;  %v259_v25 = vmul.f32 0.6931472, %v668_v23 }
  0xb4   : > { %v268_v27 = vmul.f32 0.6931472, %v670_v24 }
  0xb5   : > { %v265_v29 = vsel %vm264_vm2, %v262_v26, %v259_v25  ;;  %v172_v25 = vld [vmem:[%s924_s1 + $0x20] sm:$0xff]  ;;  %v191_v26 = vpop.permute.xlu1 %190 }
  0xb6   : > { %v275_v30 = vsel %vm251_vm3, %v229_v9, %v265_v29  ;;  %v274_v31 = vsel %vm273_vm4, %v271_v28, %v268_v27  ;;  %195 = vperm.xlu2 %662, %v172_v25  }
  0xb7   : > { %295 = vmatpush.msra.mxu2 %v275_v30  ;;  %v276_v32 = vsel %vm252_vm6, %v249_v10, %v274_v31 }
  0xb8   : > { %315 = vmatpush.msra.mxu3 %v276_v32  ;;  %608 = vmatmul.msk.f32.vlgmr.msra.gmra.mxu2 %vm277_vm5, %v169_v3 }
  0xb9   : > { %609 = vmatmul.msk.f32.vlgmr.msra.gmra.mxu3 %vm277_vm5, %v169_v3 }
 0x13b   : > { %v297_v35 = vpop.f32.mrf.mxu2 }
 0x13c   : > { %v298_v37 = vadd.f32 %v297_v35, %v181_v34  ;;  %v317_v38 = vpop.f32.mrf.mxu3 }
 0x13d   : > { %v318_v39 = vadd.f32 %v317_v38, %v181_v34 }
 0x13e   : > { %v322_v40 = vmul.f32 1.442695, %v298_v37  ;;  %vm320_vm8 = vcmp.gt.f32.partialorder %v298_v37, 20.0 }
 0x13f   : > { %v324_v41 = vmul.f32 1.442695, %v318_v39  ;;  %vm321_vm10 = vcmp.gt.f32.partialorder %v318_v39, 20.0 }
 0x140   : > { %671 = vpow2.f32 %v322_v40  ;;  %v512_v40 = vlaneseq }
 0x141   : > { %673 = vpow2.f32 %v324_v41 }
 0x142   : > { %vm514_vm0 = vcmp.lt.s32.totalorder %v512_v40, 256 }
 0x146   : > { %v672_v42 = vpop.eup %671 }
 0x147   : > { %v674_v43 = vpop.eup %673  ;;  %v326_v44 = vadd.f32 1.0, %v672_v42  ;;  %v329_v45 = vmul.f32 -0.5, %v672_v42  ;;  %v332_v49 = vand.u32 2147483647, %v672_v42 }
 0x148   : > { %v335_v46 = vadd.f32 1.0, %v674_v43  ;;  %v338_v47 = vmul.f32 -0.5, %v674_v43  ;;  %v341_v51 = vand.u32 2147483647, %v674_v43 }
 0x149   : > { %675 = vlog2.f32 %v326_v44  ;;  %v330_v48 = vadd.f32 1.0, %v329_v45  ;;  %vm333_vm7 = vcmp.lt.f32.partialorder %v332_v49, 0.0004427343 }
 0x14a   : > { %677 = vlog2.f32 %v335_v46  ;;  %v339_v50 = vadd.f32 1.0, %v338_v47  ;;  %vm342_vm9 = vcmp.lt.f32.partialorder %v341_v51, 0.0004427343 }
 0x14b   : > { %v331_v55 = vmul.f32 %v672_v42, %v330_v48 }
 0x14c   : > { %v340_v57 = vmul.f32 %v674_v43, %v339_v50 }
 0x14f   : > { %v676_v52 = vpop.eup %675 }
 0x150   : > { %v678_v53 = vpop.eup %677  ;;  %v328_v54 = vmul.f32 0.6931472, %v676_v52 }
 0x151   : > { %v337_v56 = vmul.f32 0.6931472, %v678_v53 }
 0x152   : > { %v334_v58 = vsel %vm333_vm7, %v331_v55, %v328_v54 }
 0x153   : > { %v344_v59 = vsel %vm320_vm8, %v298_v37, %v334_v58  ;;  %v343_v60 = vsel %vm342_vm9, %v340_v57, %v337_v56 }
 0x154   : > { %363 = vmatpush.msrb.mxu0 %v344_v59  ;;  %v345_v61 = vsel %vm321_vm10, %v318_v39, %v343_v60  ;;  %v196_v39 = vpop.permute.xlu2 %195 }
 0x155   : > { %383 = vmatpush.msrb.mxu1 %v345_v61  ;;  %610 = vmatmul.msk.f32.vlgmr.msrb.gmra.mxu0 %vm277_vm5, %v170_v33 }
 0x156   : > { %611 = vmatmul.msk.f32.vlgmr.msrb.gmra.mxu1 %vm277_vm5, %v170_v33 }
 0x1d2   : > { %v365_v63 = vpop.f32.mrf.mxu0 }
 0x1d3   : > { %v366_v0 = vadd.f32 %v365_v63, %v186_v62  ;;  %v385_v1 = vpop.f32.mrf.mxu1 }
 0x1d4   : > { %v386_v2 = vadd.f32 %v385_v1, %v186_v62 }
 0x1d5   : > { %v390_v3 = vmul.f32 1.442695, %v366_v0  ;;  %vm388_vm12 = vcmp.gt.f32.partialorder %v366_v0, 20.0 }
 0x1d6   : > { %v392_v4 = vmul.f32 1.442695, %v386_v2  ;;  %vm389_vm14 = vcmp.gt.f32.partialorder %v386_v2, 20.0 }
 0x1d7   : > { %679 = vpow2.f32 %v390_v3 }
 0x1d8   : > { %681 = vpow2.f32 %v392_v4 }
 0x1dd   : > { %v680_v5 = vpop.eup %679 }
 0x1de   : > { %v682_v6 = vpop.eup %681  ;;  %v394_v7 = vadd.f32 1.0, %v680_v5  ;;  %v397_v8 = vmul.f32 -0.5, %v680_v5  ;;  %v400_v12 = vand.u32 2147483647, %v680_v5 }
 0x1df   : > { %v403_v9 = vadd.f32 1.0, %v682_v6  ;;  %v406_v10 = vmul.f32 -0.5, %v682_v6  ;;  %v409_v14 = vand.u32 2147483647, %v682_v6 }
 0x1e0   : > { %683 = vlog2.f32 %v394_v7  ;;  %v398_v11 = vadd.f32 1.0, %v397_v8  ;;  %vm401_vm11 = vcmp.lt.f32.partialorder %v400_v12, 0.0004427343 }
 0x1e1   : > { %685 = vlog2.f32 %v403_v9  ;;  %v407_v13 = vadd.f32 1.0, %v406_v10  ;;  %vm410_vm13 = vcmp.lt.f32.partialorder %v409_v14, 0.0004427343 }
 0x1e2   : > { %v399_v18 = vmul.f32 %v680_v5, %v398_v11 }
 0x1e3   : > { %v408_v20 = vmul.f32 %v682_v6, %v407_v13 }
 0x1e6   : > { %v684_v15 = vpop.eup %683 }
 0x1e7   : > { %v686_v16 = vpop.eup %685  ;;  %v396_v17 = vmul.f32 0.6931472, %v684_v15 }
 0x1e8   : > { %v405_v19 = vmul.f32 0.6931472, %v686_v16 }
 0x1e9   : > { %v402_v21 = vsel %vm401_vm11, %v399_v18, %v396_v17 }
 0x1ea   : > { %v412_v22 = vsel %vm388_vm12, %v366_v0, %v402_v21  ;;  %v411_v23 = vsel %vm410_vm13, %v408_v20, %v405_v19 }
 0x1eb   : > { %431 = vmatpush.msrb.mxu2 %v412_v22  ;;  %v413_v24 = vsel %vm389_vm14, %v386_v2, %v411_v23 }
 0x1ec   : > { %451 = vmatpush.msrb.mxu3 %v413_v24  ;;  %612 = vmatmul.msk.f32.vlgmr.msrb.gmra.mxu2 %vm277_vm5, %v849_v36 }
 0x1ed   : > { %613 = vmatmul.msk.f32.vlgmr.msrb.gmra.mxu3 %vm277_vm5, %v849_v36 }
 0x26f   : > { %v433_v27 = vpop.f32.mrf.mxu2 }
 0x270   : > { %v434_v28 = vadd.f32 %v433_v27, %v191_v26  ;;  %v453_v29 = vpop.f32.mrf.mxu3 }
 0x271   : > { %v454_v30 = vadd.f32 %v453_v29, %v191_v26 }
 0x272   : > { %v456_v31 = vmul.f32 0.5, %v434_v28 }
 0x273   : > { %v457_v32 = vmul.f32 0.5, %v454_v30 }
 0x274   : > { %687 = vtanh.f32 %v456_v31 }
 0x275   : > { %689 = vtanh.f32 %v457_v32 }
 0x27a   : > { %v688_v33 = vpop.eup %687 }
 0x27b   : > { %v690_v34 = vpop.eup %689  ;;  %v460_v35 = vmul.f32 0.5, %v688_v33 }
 0x27c   : > { %v461_v37 = vmul.f32 0.5, %v690_v34 }
 0x27d   : > { %v462_v36 = vadd.f32 0.5, %v460_v35 }
 0x27e   : > { %v463_v38 = vadd.f32 0.5, %v461_v37 }
 0x27f   : > { %481 = vmatpush.msra.mxu0 %v462_v36 }
 0x280   : > { %501 = vmatpush.msra.mxu1 %v463_v38  ;;  %614 = vmatmul.msk.f32.vlgmr.msra.gmra.mxu0 %vm277_vm5, %v172_v25 }
 0x281   : > { %615 = vmatmul.msk.f32.vlgmr.msra.gmra.mxu1 %vm277_vm5, %v172_v25 }
 0x2fd   : > { %v483_v42 = vpop.f32.mrf.mxu0 }
 0x2fe   : > { %v503_v41 = vpop.f32.mrf.mxu1  ;;  %v484_v45 = vadd.f32 %v483_v42, %v196_v39 }
 0x2ff   : > { %v504_v43 = vadd.f32 %v503_v41, %v196_v39 }
 0x300   : > { %524 = sbr.rel (!%p818_p5) target bundleno = 802 (0x322), region = 32 }
 0x301   : > { %v508_v44 = vrot.slane %v504_v43, 7 }
 0x303   : > { %v510_v46 = vsel %vm509_vm15, %v484_v45, %v508_v44 }
 0x304   : > { %516 = vst.msk [vmem:[%s149_s16] sm:$0x3] %vm514_vm0, %v510_v46 }
 0x305   : > { %s933_s22 = smov (!%p527_p11, %s526_s22), 2 }
 0x306   : > { %s529_s23 = ssub.s32 2, %s933_s22 }
 0x307   : > { %s530_s24 = sshll.u32 %s529_s23, 4 }
 0x308   : > { %531 = vsyncadd %s864_s17, %s530_s24  ;;  %p618_p12 = scmp.ne.s32.totalorder %s933_s22, 0  ;;  %s533_s19 = scalar_lea.hbm %s925_s2, %s828_s21 }
 0x309   : > { %s534_s27 = sshll.u32 %s933_s22, 4  ;;  %s879_s28 = sshll.u32 %s149_s16, 4  ;;  %s536_s28 = int_to_ptr.vmem [resolvable:$true] %s879_s28 }
 0x30a   : > { %s882_s29 = sshll.u32 %s533_s19, 4  ;;  %s691_s30 = sshra.s32 %s536_s28, 4  ;;  %s538_s29 = int_to_ptr.hbm [resolvable:$true] %s882_s29  ;;  %s692_s30 = int_to_ptr.vmem [resolvable:$true] %s691_s30 }
 0x30b   : > { %s693_s3 = sshrl.u32 %s534_s27, 4  ;;  %s767_s21 = smov [#allocation2]  }
 0x30c   : > { %s698_s4 = scalar_lea.vmem %s692_s30, %s693_s3  ;;  %s702_s5 = scalar_lea.vmem %s767_s21, 4 }
 0x30d   : > { %p699_p13 = scmp.ne.s32.totalorder %s692_s30, %s698_s4  ;;  %p704_p2 = scmp.lt.s32.totalorder %s702_s5, %s698_s4 }
 0x30f   : > { %p700_p0 = pnand %p699_p13, %p618_p12 }
 0x311   : > { %p701_p1 = pneg %p700_p0 }
 0x313   : > { %p706_p3 = pnand %p704_p2, %p701_p1 }
 0x315   : > { %709 = shalt.err (!%p706_p3)
}
 0x316   : > { %s710_s6 = sshra.s32 %s538_s29, 4  ;;  %s721_s14 = scalar_lea.hbm %s925_s2, 3  ;;  %s711_s6 = int_to_ptr.hbm [resolvable:$true] %s710_s6 }
 0x317   : > { %s717_s7 = scalar_lea.hbm %s711_s6, %s693_s3  ;;  %p722_p8 = scmp.lt.s32.totalorder %s711_s6, %s925_s2 }
 0x318   : > { %p718_p4 = scmp.ne.s32.totalorder %s711_s6, %s717_s7  ;;  %p723_p9 = scmp.lt.s32.totalorder %s721_s14, %s717_s7 }
 0x31a   : > { %p719_p5 = pnand %p718_p4, %p618_p12  ;;  %p724_p10 = por %p723_p9, %p722_p8 }
 0x31c   : > { %p720_p7 = pneg %p719_p5 }
 0x31e   : > { %p725_p11 = pnand %p724_p10, %p720_p7 }
 0x320   : > { %728 = shalt.err (!%p725_p11)
}
 0x321   : > { %540 = dma.vmem_to_hbm [thread:$0]  (%p618_p12), %s536_s28, %s534_s27, %s538_s29, %s864_s17  }
 0x322 PF: > { %p626_p13 = scmp.ge.s32.totalorder %s764_s12, 2  ;;  %s549_s24 = sand.u32 1, %s752_s9  }
 0x323   : > { %s550_s25 = scalar_lea.sflag [#allocation3], %s549_s24 }
 0x324   : > { %p623_p0 = pnand %p626_p13, %p822_p6 }
 0x326   : > { %p624_p1 = pneg %p623_p0 }
 0x328   : > { %747 = dma.done.wait (%p624_p1), %s550_s25, 32  }
 0x329   : > { %749 = vsyncadd (%p624_p1), %s550_s25, 4294967264  ;;  %p12_p2 = scmp.ge.s32.totalorder %s806_s15, 4   ;;  %s928_s9 = smov %s756_s10 }
 0x32a   : > { %s929_s10 = smov %s760_s11  ;;  %s930_s11 = smov %s816_s18 }
 0x32b   : > { %s931_s12 = smov %s806_s15  ;;  %14 = sbr.rel (!%p12_p2) target bundleno = 3 (0x3), region = 63 }
 0x330   :  { %556 = vsyncpa [#allocation3], 1 }
 0x331   :  { %558 = vsyncpa [#allocation3 + $0x1], 1 }

</bundles_post_ra>
